<compile_context>
chip_gen: v5e
topology: v5e:2x2
jax: 0.10.0
libtpu: 0.0.40
codegen_flags: <defaults>
</compile_context>

<pallas_src>
import functools

import jax
import jax.numpy as jnp
from jax.experimental import pallas as pl
from jax.experimental.pallas import tpu as pltpu

HIDDEN = 128
ALIGN = 16  # bf16 sublane packing (2 packed rows per 32-bit sublane row)


def _round_up(n, m):
    return ((n + m - 1) // m) * m


def dqn_kernel(x_ref, w1_ref, b1_ref, w2_ref, b2_ref, w3_ref, b3_ref, o_ref):
    # x arrives as f32 straight from HBM; cast to bf16 on the VPU (free slot
    # in this memory-bound kernel) for the MXU fast path.
    x = x_ref[...].astype(jnp.bfloat16)

    # Layer 1: Linear + ReLU   (bf16 operands, f32 MXU accumulation)
    h1 = jnp.dot(x, w1_ref[...], preferred_element_type=jnp.float32)
    h1 = jnp.maximum(h1 + b1_ref[...], 0.0).astype(jnp.bfloat16)

    # Layer 2: Linear + ReLU
    h2 = jnp.dot(h1, w2_ref[...], preferred_element_type=jnp.float32)
    h2 = jnp.maximum(h2 + b2_ref[...], 0.0).astype(jnp.bfloat16)

    # Layer 3: Linear (no activation). Narrow (tile_b, out_dim) store: the
    # masked vst in VMEM is cheap; the HBM writeback is ~32x smaller than a
    # 128-lane padded slab.
    out = jnp.dot(h2, w3_ref[...], preferred_element_type=jnp.float32)
    o_ref[...] = (out + b3_ref[...]).astype(o_ref.dtype)


@functools.partial(jax.jit, static_argnames=("block_batch",))
def dqn_forward(x, params, *, block_batch=2048):
    w1, b1, w2, b2, w3, b3 = params
    batch, in_dim = x.shape
    out_dim = w3.shape[1]

    # Batch tiling. Large tiles amortize the ~0.35 us per-grid-step overhead.
    # No wrapper padding: Pallas masks the ragged last block, and rows are
    # fully independent so out-of-bounds garbage rows never touch valid output.
    tile_b = min(block_batch, _round_up(batch, ALIGN))
    # Ensure >= 2 grid steps when the batch is large enough, so the "parallel"
    # batch axis can shard across both v7x TensorCores.
    if batch >= 2 * ALIGN and pl.cdiv(batch, tile_b) < 2:
        tile_b = _round_up(pl.cdiv(batch, 2), ALIGN)
    tile_b = min(tile_b, batch)  # block dim must not exceed the array dim
    grid = (pl.cdiv(batch, tile_b),)

    # bf16 weights (small, VMEM-resident; cast cost negligible). Biases stay f32.
    w1b = w1.astype(jnp.bfloat16)
    w2b = w2.astype(jnp.bfloat16)
    w3b = w3.astype(jnp.bfloat16)

    def resident(shape):
        # Same block every grid step -> stays resident in VMEM, no re-DMA.
        return pl.BlockSpec(shape, lambda i: (0,) * len(shape))

    flops = 2 * batch * (in_dim * HIDDEN + HIDDEN * HIDDEN + HIDDEN * out_dim)
    bytes_accessed = (
        x.size * 4
        + (w1b.size + w2b.size + w3b.size) * 2
        + (b1.size + b2.size + b3.size) * 4
        + batch * out_dim * 4
    )

    return pl.pallas_call(
        dqn_kernel,
        out_shape=jax.ShapeDtypeStruct((batch, out_dim), jnp.float32),
        grid_spec=pl.GridSpec(
            grid=grid,
            in_specs=[
                pl.BlockSpec((tile_b, in_dim), lambda i: (i, 0)),   # x tile (f32)
                resident((in_dim, HIDDEN)),                         # w1 (bf16)
                resident((1, HIDDEN)),                              # b1 (f32)
                resident((HIDDEN, HIDDEN)),                         # w2 (bf16)
                resident((1, HIDDEN)),                              # b2 (f32)
                resident((HIDDEN, out_dim)),                        # w3 (bf16)
                resident((1, out_dim)),                             # b3 (f32)
            ],
            out_specs=pl.BlockSpec((tile_b, out_dim), lambda i: (i, 0)),
        ),
        compiler_params=pltpu.CompilerParams(
            dimension_semantics=("parallel",),
            vmem_limit_bytes=32 * 1024 * 1024,
        ),
        cost_estimate=pl.CostEstimate(
            flops=flops, transcendentals=0, bytes_accessed=bytes_accessed),
    )(x, w1b, b1, w2b, b2, w3b, b3)


def init_params(key, input_dim, output_dim):
    """Deterministic init mimicking PyTorch's default Linear init
    (uniform(-1/sqrt(fan_in), 1/sqrt(fan_in)))."""
    def linear(key, fan_in, fan_out):
        kw, kb = jax.random.split(key)
        bound = 1.0 / jnp.sqrt(fan_in)
        w = jax.random.uniform(kw, (fan_in, fan_out), jnp.float32, -bound, bound)
        b = jax.random.uniform(kb, (1, fan_out), jnp.float32, -bound, bound)
        return w, b

    k1, k2, k3 = jax.random.split(key, 3)
    w1, b1 = linear(k1, input_dim, HIDDEN)
    w2, b2 = linear(k2, HIDDEN, HIDDEN)
    w3, b3 = linear(k3, HIDDEN, output_dim)
    return (w1, b1, w2, b2, w3, b3)


def reference_forward(x, params):
    w1, b1, w2, b2, w3, b3 = params
    h1 = jnp.maximum(x @ w1 + b1, 0.0)
    h2 = jnp.maximum(h1 @ w2 + b2, 0.0)
    return h2 @ w3 + b3


if __name__ == "__main__":
    key = jax.random.PRNGKey(0)
    k_params, k_x, k_x2 = jax.random.split(key, 3)

    batch, input_dim, output_dim = 2, 8, 4
    params = init_params(k_params, input_dim, output_dim)
    x = jax.random.normal(k_x, (batch, input_dim), jnp.float32)

    out = dqn_forward(x, params)
    jax.block_until_ready(out)
    ref = reference_forward(x, params)
    assert out.shape == (batch, output_dim)
    # bf16 weights/activations vs. f32 reference -> loose tolerance.
    assert jnp.allclose(out, ref, atol=5e-2, rtol=5e-2)

    # Multi-step grid with ragged last block (300 not a multiple of 128).
    x2 = jax.random.normal(k_x2, (300, input_dim), jnp.float32)
    out2 = dqn_forward(x2, params, block_batch=128)
    jax.block_until_ready(out2)
    ref2 = reference_forward(x2, params)
    assert out2.shape == (300, output_dim)
    assert jnp.allclose(out2, ref2, atol=5e-2, rtol=5e-2)

    # Default block_batch path: forces the 2-step split (v7x megacore) + ragged tail.
    out3 = dqn_forward(x2, params)
    jax.block_until_ready(out3)
    assert jnp.allclose(out3, ref2, atol=5e-2, rtol=5e-2)

    print("KERNEL_OK")
</pallas_src>

<mosaic_0001>
module attributes {stable_mosaic.version = 11 : i64} {
  func.func @dqn_kernel(%arg0: i32, %arg1: memref<2x8xf32, #tpu.memory_space<vmem>>, %arg2: memref<8x128xbf16, #tpu.memory_space<vmem>>, %arg3: memref<1x128xf32, #tpu.memory_space<vmem>>, %arg4: memref<128x128xbf16, #tpu.memory_space<vmem>>, %arg5: memref<1x128xf32, #tpu.memory_space<vmem>>, %arg6: memref<128x4xbf16, #tpu.memory_space<vmem>>, %arg7: memref<1x4xf32, #tpu.memory_space<vmem>>, %arg8: memref<2x4xf32, #tpu.memory_space<vmem>>) attributes {dimension_semantics = [#tpu.dimension_semantics<parallel>], iteration_bounds = array<i64: 1>, scalar_prefetch = 0 : i64, scratch_operands = 0 : i64, tpu.core_type = #tpu.core_type<tc>, window_params = [{transform_indices = @transform_0, window_bounds = array<i64: 2, 8>}, {pipeline_mode = #tpu.pipeline_mode<synchronous>, transform_indices = @transform_1, window_bounds = array<i64: 8, 128>}, {pipeline_mode = #tpu.pipeline_mode<synchronous>, transform_indices = @transform_2, window_bounds = array<i64: 1, 128>}, {pipeline_mode = #tpu.pipeline_mode<synchronous>, transform_indices = @transform_3, window_bounds = array<i64: 128, 128>}, {pipeline_mode = #tpu.pipeline_mode<synchronous>, transform_indices = @transform_4, window_bounds = array<i64: 1, 128>}, {pipeline_mode = #tpu.pipeline_mode<synchronous>, transform_indices = @transform_5, window_bounds = array<i64: 128, 4>}, {pipeline_mode = #tpu.pipeline_mode<synchronous>, transform_indices = @transform_6, window_bounds = array<i64: 1, 4>}, {transform_indices = @transform_7, window_bounds = array<i64: 2, 4>}]} {
    %c0 = arith.constant 0 : index
    %c0_0 = arith.constant 0 : index
    %0 = vector.load %arg1[%c0, %c0_0] : memref<2x8xf32, #tpu.memory_space<vmem>>, vector<2x8xf32>
    %1 = arith.truncf %0 : vector<2x8xf32> to vector<2x8xbf16>
    %c0_1 = arith.constant 0 : index
    %c0_2 = arith.constant 0 : index
    %2 = vector.load %arg2[%c0_1, %c0_2] : memref<8x128xbf16, #tpu.memory_space<vmem>>, vector<8x128xbf16>
    %cst = arith.constant dense<0.000000e+00> : vector<2x128xf32>
    %3 = tpu.matmul %1, %2, %cst {dimension_numbers = #tpu.dot_dimension_numbers<[1], [0], [0], [1], [0, 0, 1, 1], [], []>} : vector<2x8xbf16>, vector<8x128xbf16>, vector<2x128xf32> -> vector<2x128xf32>
    %c0_3 = arith.constant 0 : index
    %c0_4 = arith.constant 0 : index
    %4 = vector.load %arg3[%c0_3, %c0_4] : memref<1x128xf32, #tpu.memory_space<vmem>>, vector<1x128xf32>
    %5 = vector.broadcast %4 : vector<1x128xf32> to vector<2x128xf32>
    %6 = arith.addf %3, %5 : vector<2x128xf32>
    %cst_5 = arith.constant 0.000000e+00 : f32
    %7 = vector.broadcast %cst_5 : f32 to vector<2x128xf32>
    %8 = arith.maximumf %6, %7 : vector<2x128xf32>
    %9 = arith.truncf %8 : vector<2x128xf32> to vector<2x128xbf16>
    %c0_6 = arith.constant 0 : index
    %c0_7 = arith.constant 0 : index
    %10 = vector.load %arg4[%c0_6, %c0_7] : memref<128x128xbf16, #tpu.memory_space<vmem>>, vector<128x128xbf16>
    %cst_8 = arith.constant dense<0.000000e+00> : vector<2x128xf32>
    %11 = tpu.matmul %9, %10, %cst_8 {dimension_numbers = #tpu.dot_dimension_numbers<[1], [0], [0], [1], [0, 0, 1, 1], [], []>} : vector<2x128xbf16>, vector<128x128xbf16>, vector<2x128xf32> -> vector<2x128xf32>
    %c0_9 = arith.constant 0 : index
    %c0_10 = arith.constant 0 : index
    %12 = vector.load %arg5[%c0_9, %c0_10] : memref<1x128xf32, #tpu.memory_space<vmem>>, vector<1x128xf32>
    %13 = vector.broadcast %12 : vector<1x128xf32> to vector<2x128xf32>
    %14 = arith.addf %11, %13 : vector<2x128xf32>
    %cst_11 = arith.constant 0.000000e+00 : f32
    %15 = vector.broadcast %cst_11 : f32 to vector<2x128xf32>
    %16 = arith.maximumf %14, %15 : vector<2x128xf32>
    %17 = arith.truncf %16 : vector<2x128xf32> to vector<2x128xbf16>
    %c0_12 = arith.constant 0 : index
    %c0_13 = arith.constant 0 : index
    %18 = vector.load %arg6[%c0_12, %c0_13] : memref<128x4xbf16, #tpu.memory_space<vmem>>, vector<128x4xbf16>
    %cst_14 = arith.constant dense<0.000000e+00> : vector<2x4xf32>
    %19 = tpu.matmul %17, %18, %cst_14 {dimension_numbers = #tpu.dot_dimension_numbers<[1], [0], [0], [1], [0, 0, 1, 1], [], []>} : vector<2x128xbf16>, vector<128x4xbf16>, vector<2x4xf32> -> vector<2x4xf32>
    %c0_15 = arith.constant 0 : index
    %c0_16 = arith.constant 0 : index
    %20 = vector.load %arg7[%c0_15, %c0_16] : memref<1x4xf32, #tpu.memory_space<vmem>>, vector<1x4xf32>
    %21 = vector.broadcast %20 : vector<1x4xf32> to vector<2x4xf32>
    %22 = arith.addf %19, %21 : vector<2x4xf32>
    %c0_17 = arith.constant 0 : index
    %c0_18 = arith.constant 0 : index
    %23 = vector.load %arg8[%c0_17, %c0_18] : memref<2x4xf32, #tpu.memory_space<vmem>>, vector<2x4xf32>
    tpu.vector_store %arg8[%c0_17, %c0_18], %22 {strides = array<i32>} : memref<2x4xf32, #tpu.memory_space<vmem>>, vector<2x4xf32>,
    return
  }
  func.func @transform_0(%arg0: i32) -> (i32, i32) {
    %c0_i32 = arith.constant 0 : i32
    %c0_i32_0 = arith.constant 0 : i32
    return %arg0, %c0_i32 : i32, i32
  }
  func.func @transform_1(%arg0: i32) -> (i32, i32) {
    %c0_i32 = arith.constant 0 : i32
    %c0_i32_0 = arith.constant 0 : i32
    %c0_i32_1 = arith.constant 0 : i32
    return %c0_i32, %c0_i32_0 : i32, i32
  }
  func.func @transform_2(%arg0: i32) -> (i32, i32) {
    %c0_i32 = arith.constant 0 : i32
    %c0_i32_0 = arith.constant 0 : i32
    %c0_i32_1 = arith.constant 0 : i32
    return %c0_i32, %c0_i32_0 : i32, i32
  }
  func.func @transform_3(%arg0: i32) -> (i32, i32) {
    %c0_i32 = arith.constant 0 : i32
    %c0_i32_0 = arith.constant 0 : i32
    %c0_i32_1 = arith.constant 0 : i32
    return %c0_i32, %c0_i32_0 : i32, i32
  }
  func.func @transform_4(%arg0: i32) -> (i32, i32) {
    %c0_i32 = arith.constant 0 : i32
    %c0_i32_0 = arith.constant 0 : i32
    %c0_i32_1 = arith.constant 0 : i32
    return %c0_i32, %c0_i32_0 : i32, i32
  }
  func.func @transform_5(%arg0: i32) -> (i32, i32) {
    %c0_i32 = arith.constant 0 : i32
    %c0_i32_0 = arith.constant 0 : i32
    %c0_i32_1 = arith.constant 0 : i32
    return %c0_i32, %c0_i32_0 : i32, i32
  }
  func.func @transform_6(%arg0: i32) -> (i32, i32) {
    %c0_i32 = arith.constant 0 : i32
    %c0_i32_0 = arith.constant 0 : i32
    %c0_i32_1 = arith.constant 0 : i32
    return %c0_i32, %c0_i32_0 : i32, i32
  }
  func.func @transform_7(%arg0: i32) -> (i32, i32) {
    %c0_i32 = arith.constant 0 : i32
    %c0_i32_0 = arith.constant 0 : i32
    return %arg0, %c0_i32 : i32, i32
  }
}

</mosaic_0001>

<bundles_post_ra>
// kernel: dqn_forward.1
= control target key start
LH: loop header
LB: loop body
LE: loop exit
PB: predicated region body
PF: predicated region fallthrough
CT: control target
= control target key end

     0   :  { %vm39_vm0 = vcmask 1043456   ;;  %vm35_vm1 = vcmask 64512   ;;  %s458_s0 = inlined_call_operand.vmem [shape: f32[2,8], index: 0, kind: input, shape index: {}]   ;;  %s459_s1 = inlined_call_operand.vmem [shape: bf16[8,128], index: 1, kind: input, shape index: {}]   ;;  %s460_s2 = inlined_call_operand.vmem [shape: f32[1,128], index: 2, kind: input, shape index: {}]   ;;  %s461_s3 = inlined_call_operand.vmem [shape: bf16[128,128], index: 3, kind: input, shape index: {}]   ;;  %s462_s4 = inlined_call_operand.vmem [shape: f32[1,128], index: 4, kind: input, shape index: {}]   ;;  %s463_s5 = inlined_call_operand.vmem [shape: bf16[128,4], index: 5, kind: input, shape index: {}]   ;;  %s464_s6 = inlined_call_operand.vmem [shape: f32[1,4], index: 6, kind: input, shape index: {}]   ;;  %s465_s7 = inlined_call_operand.hbm [shape: f32[2,4], index: 7, kind: output, shape index: {}]  }
   0x1   :  { %v30_v0 = vld [vmem:[%s459_s1] sm:$0xf]  ;;  %v312_v4 = vld [vmem:[%s461_s3 + $0x38] sm:$0xff]  ;;  %v311_v5 = vld [vmem:[%s461_s3 + $0x30] sm:$0xff] }
   0x2   :  { %v28_v1 = vld [vmem:[%s458_s0] sm:$0x3]  ;;  %v41_v2 = vsel %vm39_vm0, %v30_v0, 0  ;;  %126 = vmatpush.bf16.msra.mxu1 %v312_v4 }
   0x3   :  { %v29_v3 = vpack.c.bf16 %v28_v1, %v28_v1  ;;  %50 = vmatpush.bf16.msra.mxu0 %v41_v2 }
   0x4   :  { %12 = vsyncpa [#allocation3], 0  ;;  %v310_v6 = vld [vmem:[%s461_s3 + $0x28] sm:$0xff]  ;;  %v309_v7 = vld [vmem:[%s461_s3 + $0x20] sm:$0xff]  ;;  %s351_s14 = smov [#allocation2]   ;;  %vm222_vm2 = vcmask 25600  }
   0x5   :  { %v308_v8 = vld [vmem:[%s461_s3 + $0x18] sm:$0xff]  ;;  %v307_v9 = vld [vmem:[%s461_s3 + $0x10] sm:$0xff]  ;;  %v306_v10 = vld [vmem:[%s461_s3 + $0x8] sm:$0xff]  ;;  %s229_s15 = sshll.u32 %s351_s14, 4  ;;  %s230_s15 = int_to_ptr.vmem [resolvable:$true] %s229_s15 }
   0x6   :  { %240 = vmatmul.msk.bf16.vlgmr.msra.gmra.mxu0 %vm35_vm1, %v29_v3  ;;  %127 = vmatpush.bf16.msra.mxu1 %v311_v5  ;;  %v305_v11 = vld [vmem:[%s461_s3] sm:$0xff]  ;;  %v320_v12 = vld [vmem:[%s463_s5 + $0x38] sm:$0xff]  ;;  %v319_v13 = vld [vmem:[%s463_s5 + $0x30] sm:$0xff] }
   0x7   :  { %209 = vmatpush.bf16.msra.mxu2 %v320_v12  ;;  %v318_v14 = vld [vmem:[%s463_s5 + $0x28] sm:$0xff]  ;;  %v317_v15 = vld [vmem:[%s463_s5 + $0x20] sm:$0xff]  ;;  %v316_v16 = vld [vmem:[%s463_s5 + $0x18] sm:$0xff] }
   0x8   :  { %v315_v17 = vld [vmem:[%s463_s5 + $0x10] sm:$0xff]  ;;  %v322_v18 = vld [vmem:[%s460_s2] ss:$0 sm:$0xff]  ;;  %v314_v24 = vld [vmem:[%s463_s5 + $0x8] sm:$0xff] }
   0x9   :  { %v313_v25 = vld [vmem:[%s463_s5] sm:$0xff]  ;;  %s231_s5 = sshll.u32 %s465_s7, 4  ;;  %s232_s5 = int_to_ptr.hbm [resolvable:$true] %s231_s5 }
   0xa   :  { %128 = vmatpush.bf16.msra.mxu1 %v310_v6  ;;  %v323_v26 = vld [vmem:[%s462_s4] ss:$0 sm:$0xff] }
   0xb   :  { %210 = vmatpush.bf16.msra.mxu2 %v319_v13  ;;  %v324_v32 = vld [vmem:[%s464_s6] ss:$0 sm:$0xff] }
   0xe   :  { %129 = vmatpush.bf16.msra.mxu1 %v309_v7 }
   0xf   :  { %211 = vmatpush.bf16.msra.mxu2 %v318_v14 }
  0x12   :  { %130 = vmatpush.bf16.msra.mxu1 %v308_v8 }
  0x13   :  { %212 = vmatpush.bf16.msra.mxu2 %v317_v15 }
  0x16   :  { %131 = vmatpush.bf16.msra.mxu1 %v307_v9 }
  0x17   :  { %213 = vmatpush.bf16.msra.mxu2 %v316_v16 }
  0x1a   :  { %132 = vmatpush.bf16.msra.mxu1 %v306_v10 }
  0x1b   :  { %214 = vmatpush.bf16.msra.mxu2 %v315_v17 }
  0x1e   :  { %133 = vmatpush.bf16.msra.mxu1 %v305_v11 }
  0x1f   :  { %215 = vmatpush.bf16.msra.mxu2 %v314_v24 }
  0x23   :  { %216 = vmatpush.bf16.msra.mxu2 %v313_v25 }
  0x83   :  { %v52_v19 = vpop.f32.mrf.mxu0 }
  0x84   :  { %v53_v20 = vadd.f32 %v322_v18, %v52_v19 }
  0x86   :  { %v56_v21 = vmax.f32 %v53_v20, 0.0 }
  0x88   :  { %v57_v22 = vpack.c.bf16 %v56_v21, %v56_v21 }
  0x8a   :  { %134 = vmatmul.bf16.vlgmr.msra.gmra.mxu1 %v57_v22 }
  0x8b   :  { %v54_v23 = vpop.f32.mrf.mxu0 }
 0x107   :  { %v135_v27 = vpop.f32.mrf.mxu1 }
 0x108   :  { %v136_v28 = vadd.f32 %v323_v26, %v135_v27 }
 0x10a   :  { %v139_v29 = vmax.f32 %v136_v28, 0.0 }
 0x10c   :  { %v140_v30 = vpack.c.bf16 %v139_v29, %v139_v29 }
 0x10e   :  { %217 = vmatmul.bf16.vlgmr.msra.gmra.mxu2 %v140_v30 }
 0x10f   :  { %v137_v31 = vpop.f32.mrf.mxu1 }
 0x191   :  { %v218_v33 = vpop.f32.mrf.mxu2 }
 0x192   :  { %v219_v34 = vadd.f32 %v324_v32, %v218_v33 }
 0x194   :  { %223 = vst.msk [vmem:[#allocation2] sm:$0x3] %vm222_vm2, %v219_v34 }
 0x195   :  { %234 = dma.vmem_to_hbm [thread:$0]  %s230_s15, 32, %s232_s5, [#allocation3]  }
 0x199   :  { %v220_v35 = vpop.f32.mrf.mxu2 }
 0x19a   :  { %349 = dma.done.wait [#allocation3], 32  }
 0x19b   :  { %350 = vsyncadd [#allocation3], 4294967264 }
 0x19c   :  { %239 = vsyncpa [#allocation3], 1 }

</bundles_post_ra>
